<compile_context>
chip_gen: v5e
topology: v5e:2x2
jax: 0.10.0
libtpu: 0.0.40
codegen_flags: <defaults>
</compile_context>

<pallas_src>
import functools

import jax
import jax.numpy as jnp
from jax.experimental import pallas as pl
from jax.experimental.pallas import tpu as pltpu

LANES = 128


def _round_up(n, m):
    return (n + m - 1) // m * m


# ------------------------------- kernel ------------------------------------ #

def _fused_mlp_kernel(*refs, n_hidden, has_out, eps):
    """Entire MLP in one kernel invocation; activations stay on-chip.

    refs layout:
      [x_ref,
       (w_ref, gamma_ref, beta_ref) * n_hidden,      # hidden Linear bias is dead under BN
       (w_out_ref, b_out_ref) if has_out,
       o_ref]
    """
    idx = 0
    h = refs[idx][...].astype(jnp.float32)
    idx += 1

    for _ in range(n_hidden):
        w_ref, g_ref, be_ref = refs[idx:idx + 3]
        idx += 3
        # Linear (bias omitted: BN centering cancels it exactly).
        # bf16 operands on the MXU, f32 accumulation.
        z = jnp.dot(h.astype(jnp.bfloat16), w_ref[...],
                    preferred_element_type=jnp.float32)
        # BatchNorm1d, training mode: biased batch statistics over the batch axis.
        mean = jnp.mean(z, axis=0, keepdims=True)
        zc = z - mean
        var = jnp.mean(zc * zc, axis=0, keepdims=True)
        scale = g_ref[...] * jax.lax.rsqrt(var + eps)          # rsqrt -> EUP slot
        # ReLU (Dropout = identity here; see TODO at top of file).
        h = jnp.maximum(zc * scale + be_ref[...], 0.0)

    o_ref = refs[-1]
    if has_out:
        w_out_ref, b_out_ref = refs[idx:idx + 2]
        # Dout == 1 head: weight is a zero-padded (Din_pad, 128) slab, so both the matmul
        # output tile and the stores are lane-dense (unmasked vst). Column 0 is the real
        # result; the wrapper slices it out.
        s = jnp.dot(h.astype(jnp.bfloat16), w_out_ref[...],
                    preferred_element_type=jnp.float32)
        o_ref[...] = s + b_out_ref[...]
    else:
        o_ref[...] = h


# ------------------------------- wrapper ------------------------------------ #

def mlp_forward(x, params, eps=1e-5):
    """Run the whole MLP as one pallas_call with lane-dense (128-padded) feature dims."""
    batch, d_in = x.shape
    d_in_pad = _round_up(d_in, LANES)
    x_p = jnp.pad(x.astype(jnp.float32), ((0, 0), (0, d_in_pad - d_in)))

    flat_inputs = [x_p]
    n_hidden = 0
    has_out = False
    flops = 0
    transcendentals = 0
    d_prev, d_prev_pad = d_in, d_in_pad
    out_feat = d_in

    for p in params:
        if p[0] == "hidden":
            # Hidden Linear bias `b` is intentionally NOT passed: BN centering cancels it.
            _, w_t, _b, gamma, beta = p
            d_out = w_t.shape[1]
            d_out_pad = _round_up(d_out, LANES)
            w_p = jnp.pad(w_t, ((0, d_prev_pad - d_prev), (0, d_out_pad - d_out)))
            g_p = jnp.pad(gamma, ((0, 0), (0, d_out_pad - d_out)))
            be_p = jnp.pad(beta, ((0, 0), (0, d_out_pad - d_out)))
            flat_inputs += [w_p.astype(jnp.bfloat16), g_p, be_p]
            flops += 2 * batch * d_prev_pad * d_out_pad
            transcendentals += d_out_pad
            n_hidden += 1
            d_prev, d_prev_pad = d_out, d_out_pad
            out_feat = d_out
        else:
            _, w_row, b = p                       # w_row: (1, Din), b: (1, 1)
            # (Din, 1) -> zero-pad to a lane-dense (Din_pad, 128) slab (real data in col 0).
            w_slab = jnp.pad(w_row.T, ((0, d_prev_pad - d_prev), (0, LANES - 1)))
            flat_inputs += [w_slab.astype(jnp.bfloat16), b.astype(jnp.float32)]
            flops += 2 * batch * d_prev_pad * LANES
            has_out = True
            out_feat = 1

    if has_out:
        out_shape = jax.ShapeDtypeStruct((batch, LANES), jnp.float32)
        out_bytes = batch * LANES * 4
    else:
        out_shape = jax.ShapeDtypeStruct((batch, d_prev_pad), jnp.float32)
        out_bytes = batch * d_prev_pad * 4

    bytes_accessed = int(sum(a.size * a.dtype.itemsize for a in flat_inputs) + out_bytes)

    kernel = functools.partial(
        _fused_mlp_kernel, n_hidden=n_hidden, has_out=has_out, eps=eps)

    vmem_spec = pl.BlockSpec(memory_space=pltpu.MemorySpace.VMEM)
    out = pl.pallas_call(
        kernel,
        out_shape=out_shape,
        in_specs=[vmem_spec] * len(flat_inputs),
        out_specs=vmem_spec,
        compiler_params=pltpu.CompilerParams(
            # Explicit VMEM budget (v7x: 64 MiB physical, 32 MiB scoped default).
            vmem_limit_bytes=32 * 1024 * 1024),
        cost_estimate=pl.CostEstimate(
            flops=int(flops),
            transcendentals=int(transcendentals),
            bytes_accessed=bytes_accessed),
    )(*flat_inputs)

    if has_out:
        return out[:, :1]          # slice the real column from the lane-dense slab
    return out[:, :out_feat]


# ------------------------- parameter construction --------------------------- #

def init_mlp_params(key, input_dim, embed_dims, output_layer=True):
    """Deterministic f32 params matching torch.nn.Linear / BatchNorm1d __init__ shapes."""
    params = []
    d_in = input_dim
    for d_out in embed_dims:
        key, k_w, k_b = jax.random.split(key, 3)
        bound = 1.0 / (d_in ** 0.5)
        w_t = jax.random.uniform(k_w, (d_in, d_out), jnp.float32, -bound, bound)
        b = jax.random.uniform(k_b, (1, d_out), jnp.float32, -bound, bound)
        gamma = jnp.ones((1, d_out), jnp.float32)   # BatchNorm1d default weight
        beta = jnp.zeros((1, d_out), jnp.float32)   # BatchNorm1d default bias
        params.append(("hidden", w_t, b, gamma, beta))
        d_in = d_out
    if output_layer:
        key, k_w, k_b = jax.random.split(key, 3)
        bound = 1.0 / (d_in ** 0.5)
        w_row = jax.random.uniform(k_w, (1, d_in), jnp.float32, -bound, bound)
        b = jax.random.uniform(k_b, (1, 1), jnp.float32, -bound, bound)
        params.append(("out", w_row, b))
    return params


# ---------------------------- pure-JAX reference ----------------------------- #

def mlp_reference(x, params, eps=1e-5):
    """Torch train-mode math (incl. hidden bias) with the same bf16-operand /
    f32-accumulate matmul precision the kernel uses."""
    h = x.astype(jnp.float32)
    for p in params:
        if p[0] == "hidden":
            _, w_t, b, gamma, beta = p
            z = jnp.dot(h.astype(jnp.bfloat16), w_t.astype(jnp.bfloat16),
                        preferred_element_type=jnp.float32) + b
            mean = jnp.mean(z, axis=0, keepdims=True)
            zc = z - mean
            var = jnp.mean(zc * zc, axis=0, keepdims=True)
            h = jnp.maximum(zc * (gamma * jax.lax.rsqrt(var + eps)) + beta, 0.0)
        else:
            _, w_row, b = p
            h = jnp.dot(h.astype(jnp.bfloat16), w_row.astype(jnp.bfloat16).T,
                        preferred_element_type=jnp.float32) + b
    return h


# ----------------------------------- main ------------------------------------ #

if __name__ == "__main__":
    batch = 8
    input_dim = 32
    embed_dims = (64, 32)
    dropout = 0.2  # identity in this deterministic forward

    key = jax.random.PRNGKey(0)
    key, kx = jax.random.split(key)
    x = jax.random.normal(kx, (batch, input_dim), dtype=jnp.float32)

    params = init_mlp_params(key, input_dim, embed_dims, output_layer=True)

    out = mlp_forward(x, params)
    out = jax.block_until_ready(out)
    assert out.shape == (batch, 1), out.shape

    ref = jax.block_until_ready(mlp_reference(x, params))
    max_err = float(jnp.max(jnp.abs(out - ref)))
    assert max_err < 2e-3, f"mismatch vs reference: {max_err}"

    print("KERNEL_OK")
</pallas_src>

<mosaic_0001>
module attributes {stable_mosaic.version = 11 : i64} {
  func.func @_fused_mlp_kernel(%arg0: memref<8x128xf32, #tpu.memory_space<vmem>>, %arg1: memref<128x128xbf16, #tpu.memory_space<vmem>>, %arg2: memref<1x128xf32, #tpu.memory_space<vmem>>, %arg3: memref<1x128xf32, #tpu.memory_space<vmem>>, %arg4: memref<128x128xbf16, #tpu.memory_space<vmem>>, %arg5: memref<1x128xf32, #tpu.memory_space<vmem>>, %arg6: memref<1x128xf32, #tpu.memory_space<vmem>>, %arg7: memref<128x128xbf16, #tpu.memory_space<vmem>>, %arg8: memref<1x1xf32, #tpu.memory_space<vmem>>, %arg9: memref<8x128xf32, #tpu.memory_space<vmem>>) attributes {dimension_semantics = [], scalar_prefetch = 0 : i64, scratch_operands = 0 : i64, tpu.core_type = #tpu.core_type<tc>} {
    %c0 = arith.constant 0 : index
    %c0_0 = arith.constant 0 : index
    %0 = vector.load %arg0[%c0, %c0_0] : memref<8x128xf32, #tpu.memory_space<vmem>>, vector<8x128xf32>
    %1 = arith.truncf %0 : vector<8x128xf32> to vector<8x128xbf16>
    %c0_1 = arith.constant 0 : index
    %c0_2 = arith.constant 0 : index
    %2 = vector.load %arg1[%c0_1, %c0_2] : memref<128x128xbf16, #tpu.memory_space<vmem>>, vector<128x128xbf16>
    %cst = arith.constant dense<0.000000e+00> : vector<8x128xf32>
    %3 = tpu.matmul %1, %2, %cst {dimension_numbers = #tpu.dot_dimension_numbers<[1], [0], [0], [1], [0, 0, 1, 1], [], []>} : vector<8x128xbf16>, vector<128x128xbf16>, vector<8x128xf32> -> vector<8x128xf32>
    %cst_3 = arith.constant dense<0.000000e+00> : vector<128xf32>
    %4 = vector.multi_reduction <add>, %3, %cst_3 [0] : vector<8x128xf32> to vector<128xf32>
    %5 = vector.shape_cast %4 : vector<128xf32> to vector<1x128xf32>
    %cst_4 = arith.constant 8.000000e+00 : f32
    %6 = vector.broadcast %cst_4 : f32 to vector<1x128xf32>
    %7 = arith.divf %5, %6 : vector<1x128xf32>
    %8 = vector.broadcast %7 : vector<1x128xf32> to vector<8x128xf32>
    %9 = arith.subf %3, %8 : vector<8x128xf32>
    %10 = arith.mulf %9, %9 : vector<8x128xf32>
    %cst_5 = arith.constant dense<0.000000e+00> : vector<128xf32>
    %11 = vector.multi_reduction <add>, %10, %cst_5 [0] : vector<8x128xf32> to vector<128xf32>
    %12 = vector.shape_cast %11 : vector<128xf32> to vector<1x128xf32>
    %cst_6 = arith.constant 8.000000e+00 : f32
    %13 = vector.broadcast %cst_6 : f32 to vector<1x128xf32>
    %14 = arith.divf %12, %13 : vector<1x128xf32>
    %c0_7 = arith.constant 0 : index
    %c0_8 = arith.constant 0 : index
    %15 = vector.load %arg2[%c0_7, %c0_8] : memref<1x128xf32, #tpu.memory_space<vmem>>, vector<1x128xf32>
    %cst_9 = arith.constant 9.99999974E-6 : f32
    %16 = vector.broadcast %cst_9 : f32 to vector<1x128xf32>
    %17 = arith.addf %14, %16 : vector<1x128xf32>
    %18 = math.rsqrt %17 : vector<1x128xf32>
    %19 = arith.mulf %15, %18 : vector<1x128xf32>
    %20 = vector.broadcast %19 : vector<1x128xf32> to vector<8x128xf32>
    %21 = arith.mulf %9, %20 : vector<8x128xf32>
    %c0_10 = arith.constant 0 : index
    %c0_11 = arith.constant 0 : index
    %22 = vector.load %arg3[%c0_10, %c0_11] : memref<1x128xf32, #tpu.memory_space<vmem>>, vector<1x128xf32>
    %23 = vector.broadcast %22 : vector<1x128xf32> to vector<8x128xf32>
    %24 = arith.addf %21, %23 : vector<8x128xf32>
    %cst_12 = arith.constant 0.000000e+00 : f32
    %25 = vector.broadcast %cst_12 : f32 to vector<8x128xf32>
    %26 = arith.maximumf %24, %25 : vector<8x128xf32>
    %27 = arith.truncf %26 : vector<8x128xf32> to vector<8x128xbf16>
    %c0_13 = arith.constant 0 : index
    %c0_14 = arith.constant 0 : index
    %28 = vector.load %arg4[%c0_13, %c0_14] : memref<128x128xbf16, #tpu.memory_space<vmem>>, vector<128x128xbf16>
    %cst_15 = arith.constant dense<0.000000e+00> : vector<8x128xf32>
    %29 = tpu.matmul %27, %28, %cst_15 {dimension_numbers = #tpu.dot_dimension_numbers<[1], [0], [0], [1], [0, 0, 1, 1], [], []>} : vector<8x128xbf16>, vector<128x128xbf16>, vector<8x128xf32> -> vector<8x128xf32>
    %cst_16 = arith.constant dense<0.000000e+00> : vector<128xf32>
    %30 = vector.multi_reduction <add>, %29, %cst_16 [0] : vector<8x128xf32> to vector<128xf32>
    %31 = vector.shape_cast %30 : vector<128xf32> to vector<1x128xf32>
    %cst_17 = arith.constant 8.000000e+00 : f32
    %32 = vector.broadcast %cst_17 : f32 to vector<1x128xf32>
    %33 = arith.divf %31, %32 : vector<1x128xf32>
    %34 = vector.broadcast %33 : vector<1x128xf32> to vector<8x128xf32>
    %35 = arith.subf %29, %34 : vector<8x128xf32>
    %36 = arith.mulf %35, %35 : vector<8x128xf32>
    %cst_18 = arith.constant dense<0.000000e+00> : vector<128xf32>
    %37 = vector.multi_reduction <add>, %36, %cst_18 [0] : vector<8x128xf32> to vector<128xf32>
    %38 = vector.shape_cast %37 : vector<128xf32> to vector<1x128xf32>
    %cst_19 = arith.constant 8.000000e+00 : f32
    %39 = vector.broadcast %cst_19 : f32 to vector<1x128xf32>
    %40 = arith.divf %38, %39 : vector<1x128xf32>
    %c0_20 = arith.constant 0 : index
    %c0_21 = arith.constant 0 : index
    %41 = vector.load %arg5[%c0_20, %c0_21] : memref<1x128xf32, #tpu.memory_space<vmem>>, vector<1x128xf32>
    %cst_22 = arith.constant 9.99999974E-6 : f32
    %42 = vector.broadcast %cst_22 : f32 to vector<1x128xf32>
    %43 = arith.addf %40, %42 : vector<1x128xf32>
    %44 = math.rsqrt %43 : vector<1x128xf32>
    %45 = arith.mulf %41, %44 : vector<1x128xf32>
    %46 = vector.broadcast %45 : vector<1x128xf32> to vector<8x128xf32>
    %47 = arith.mulf %35, %46 : vector<8x128xf32>
    %c0_23 = arith.constant 0 : index
    %c0_24 = arith.constant 0 : index
    %48 = vector.load %arg6[%c0_23, %c0_24] : memref<1x128xf32, #tpu.memory_space<vmem>>, vector<1x128xf32>
    %49 = vector.broadcast %48 : vector<1x128xf32> to vector<8x128xf32>
    %50 = arith.addf %47, %49 : vector<8x128xf32>
    %cst_25 = arith.constant 0.000000e+00 : f32
    %51 = vector.broadcast %cst_25 : f32 to vector<8x128xf32>
    %52 = arith.maximumf %50, %51 : vector<8x128xf32>
    %53 = arith.truncf %52 : vector<8x128xf32> to vector<8x128xbf16>
    %c0_26 = arith.constant 0 : index
    %c0_27 = arith.constant 0 : index
    %54 = vector.load %arg7[%c0_26, %c0_27] : memref<128x128xbf16, #tpu.memory_space<vmem>>, vector<128x128xbf16>
    %cst_28 = arith.constant dense<0.000000e+00> : vector<8x128xf32>
    %55 = tpu.matmul %53, %54, %cst_28 {dimension_numbers = #tpu.dot_dimension_numbers<[1], [0], [0], [1], [0, 0, 1, 1], [], []>} : vector<8x128xbf16>, vector<128x128xbf16>, vector<8x128xf32> -> vector<8x128xf32>
    %c0_29 = arith.constant 0 : index
    %c0_30 = arith.constant 0 : index
    %56 = vector.load %arg8[%c0_29, %c0_30] : memref<1x1xf32, #tpu.memory_space<vmem>>, vector<1x1xf32>
    %57 = vector.broadcast %56 : vector<1x1xf32> to vector<8x128xf32>
    %58 = arith.addf %55, %57 : vector<8x128xf32>
    %c0_31 = arith.constant 0 : index
    %c0_32 = arith.constant 0 : index
    %59 = vector.load %arg9[%c0_31, %c0_32] : memref<8x128xf32, #tpu.memory_space<vmem>>, vector<8x128xf32>
    tpu.vector_store %arg9[%c0_31, %c0_32], %58 {strides = array<i32>} : memref<8x128xf32, #tpu.memory_space<vmem>>, vector<8x128xf32>,
    return
  }
}

</mosaic_0001>

<bundles_post_ra>
// kernel: tpu_custom_call.1
= control target key start
LH: loop header
LB: loop body
LE: loop exit
PB: predicated region body
PF: predicated region fallthrough
CT: control target
= control target key end

     0   :  { %s805_s0 = inlined_call_operand.hbm [shape: f32[8,128], index: 0, kind: input, shape index: {}]   ;;  %s806_s1 = inlined_call_operand.hbm [shape: bf16[128,128], index: 1, kind: input, shape index: {}]   ;;  %s807_s2 = inlined_call_operand.vmem [shape: f32[1,128], index: 2, kind: input, shape index: {}]   ;;  %s808_s3 = inlined_call_operand.vmem [shape: f32[1,128], index: 3, kind: input, shape index: {}]   ;;  %s809_s4 = inlined_call_operand.hbm [shape: bf16[128,128], index: 4, kind: input, shape index: {}]   ;;  %s810_s5 = inlined_call_operand.vmem [shape: f32[1,128], index: 5, kind: input, shape index: {}]   ;;  %s811_s6 = inlined_call_operand.vmem [shape: f32[1,128], index: 6, kind: input, shape index: {}]   ;;  %s812_s7 = inlined_call_operand.hbm [shape: bf16[128,128], index: 7, kind: input, shape index: {}]   ;;  %s813_s8 = inlined_call_operand.<no memory space> [shape: f32[1,1], index: 8, kind: input, shape index: {}]   ;;  %s814_s9 = inlined_call_operand.hbm [shape: f32[8,128], index: 9, kind: output, shape index: {}]  }
   0x1   :  { %v14_v0 = vstv %s813_s8 }
   0x2   :  { %15 = vst [vmem:[#allocation2] sm:$0x1] %v14_v0 }
   0x3   :  { %16 = vsyncpa [#allocation4], 0 }
   0x4   :  { %17 = vsyncpa [#allocation7], 0 }
   0x5   :  { %18 = vsyncpa [#allocation10], 0  ;;  %s35_s13 = sshll.u32 %s806_s1, 4  ;;  %s36_s13 = int_to_ptr.hbm [resolvable:$true] %s35_s13 }
   0x6   :  { %19 = vsyncpa [#allocation5], 0  ;;  %s710_s14 = smov [#allocation6]   ;;  %s25_s18 = sshll.u32 %s805_s0, 4  ;;  %s26_s18 = int_to_ptr.hbm [resolvable:$true] %s25_s18 }
   0x7   :  { %s37_s15 = sshll.u32 %s710_s14, 4  ;;  %s711_s19 = smov 64   ;;  %s38_s15 = int_to_ptr.vmem [resolvable:$true] %s37_s15 }
   0x8   :  { %s712_s20 = smov 4   ;;  %s713_s8 = smov [#allocation3]  }
   0x9   :  { %43 = dma.hbm_to_vmem [thread:$0]  %s36_s13, 1024, %s38_s15, [#allocation7], %s711_s19, %s711_s19, %s712_s20  }
   0xa   :  { %s27_s21 = sshll.u32 %s713_s8, 4  ;;  %s52_s24 = sshll.u32 %s809_s4, 4  ;;  %s28_s21 = int_to_ptr.vmem [resolvable:$true] %s27_s21  ;;  %s53_s24 = int_to_ptr.hbm [resolvable:$true] %s52_s24 }
   0xb   :  { %30 = dma.hbm_to_vmem [thread:$0]  %s26_s18, 128, %s28_s21, [#allocation4]  }
   0xc   :  { %s69_s26 = sshll.u32 %s812_s7, 4  ;;  %s714_s27 = smov [#allocation8]   ;;  %s70_s26 = int_to_ptr.hbm [resolvable:$true] %s69_s26 }
   0xd   :  { %s54_s28 = sshll.u32 %s714_s27, 4  ;;  %s715_s0 = smov [#allocation9]   ;;  %s55_s28 = int_to_ptr.vmem [resolvable:$true] %s54_s28 }
   0xe   :  { %60 = dma.hbm_to_vmem [thread:$0]  %s53_s24, 1024, %s55_s28, [#allocation7], %s711_s19, %s711_s19, %s712_s20  }
   0xf   :  { %s71_s29 = sshll.u32 %s715_s0, 4  ;;  %s72_s29 = int_to_ptr.vmem [resolvable:$true] %s71_s29 }
  0x10   :  { %77 = dma.hbm_to_vmem [thread:$0]  %s70_s26, 1024, %s72_s29, [#allocation10], %s711_s19, %s711_s19, %s712_s20  }
  0x11   :  { %702 = dma.done.wait [#allocation4], 128  }
  0x12   :  { %703 = vsyncadd [#allocation4], 4294967168 }
  0x13   :  { %704 = dma.done.wait [#allocation7], 2048  }
  0x14   :  { %705 = vsyncadd [#allocation7], 4294965248 }
  0x15   :  { %706 = dma.done.wait [#allocation10], 1024  }
  0x16   :  { %707 = vsyncadd [#allocation10], 4294966272  ;;  %v546_v1 = vld [vmem:[#allocation6 + $0x38] sm:$0xff]  ;;  %v545_v2 = vld [vmem:[#allocation6 + $0x30] sm:$0xff]  ;;  %v716_v11 = vmov 8.0   ;;  %s718_s13 = smov [#allocation11]  }
  0x17   :  { %162 = vmatpush.bf16.msra.mxu0 %v546_v1  ;;  %v544_v3 = vld [vmem:[#allocation6 + $0x28] sm:$0xff]  ;;  %v543_v4 = vld [vmem:[#allocation6 + $0x20] sm:$0xff]  ;;  %v542_v5 = vld [vmem:[#allocation6 + $0x18] sm:$0xff]  ;;  %576 = vrcp.f32 %v716_v11  ;;  %s429_s14 = sshll.u32 %s718_s13, 4  ;;  %s431_s16 = sshll.u32 %s814_s9, 4  ;;  %s430_s14 = int_to_ptr.vmem [resolvable:$true] %s429_s14  ;;  %s432_s16 = int_to_ptr.hbm [resolvable:$true] %s431_s16 }
  0x18   :  { %v541_v6 = vld [vmem:[#allocation6 + $0x10] sm:$0xff]  ;;  %v540_v7 = vld [vmem:[#allocation6 + $0x8] sm:$0xff]  ;;  %v539_v8 = vld [vmem:[#allocation6] sm:$0xff] }
  0x19   :  { %v96_v9 = vld [vmem:[#allocation3] sm:$0xff]  ;;  %v553_v20 = vld [vmem:[#allocation8 + $0x30] sm:$0xff]  ;;  %v552_v23 = vld [vmem:[#allocation8 + $0x28] sm:$0xff] }
  0x1a   :  { %v97_v10 = vpack.c.bf16 %v96_v9, %v96_v9  ;;  %v554_v16 = vld [vmem:[#allocation8 + $0x38] sm:$0xff]  ;;  %v551_v28 = vld [vmem:[#allocation8 + $0x20] sm:$0xff]  ;;  %v549_v34 = vld [vmem:[#allocation8 + $0x10] sm:$0xff] }
  0x1b   :  { %163 = vmatpush.bf16.msra.mxu0 %v545_v2  ;;  %286 = vmatpush.bf16.msra.mxu1 %v554_v16  ;;  %v550_v31 = vld [vmem:[#allocation8 + $0x18] sm:$0xff]  ;;  %v548_v37 = vld [vmem:[#allocation8 + $0x8] sm:$0xff]  ;;  %v547_v40 = vld [vmem:[#allocation8] sm:$0xff] }
  0x1c   :  { %v198_v50 = vld [vmem:[%s807_s2] sm:$0x1]  ;;  %v562_v61 = vld [vmem:[#allocation9 + $0x38] sm:$0xff]  ;;  %v560_v2 = vld [vmem:[#allocation9 + $0x28] sm:$0xff] }
  0x1d   :  { %v577_v12 = vpop.eup %576  ;;  %v573_v55 = vld [vmem:[%s808_s3] ss:$0 sm:$0xff]  ;;  %410 = vmatpush.bf16.msra.mxu2 %v562_v61  ;;  %v558_v9 = vld [vmem:[#allocation9 + $0x18] sm:$0xff] }
  0x1e   :  { %v182_v13 = vmul.f32 8.0, %v577_v12  ;;  %vm186_vm0 = vweird.f32 %v577_v12  ;;  %v561_v0 = vld [vmem:[#allocation9 + $0x30] sm:$0xff] }
  0x1f   :  { %164 = vmatpush.bf16.msra.mxu0 %v544_v3  ;;  %287 = vmatpush.bf16.msra.mxu1 %v553_v20 }
  0x20   :  { %v183_v14 = vsub.f32 1.0, %v182_v13 }
  0x21   :  { %411 = vmatpush.bf16.msra.mxu2 %v561_v0 }
  0x22   :  { %v184_v18 = vmul.f32 %v577_v12, %v183_v14 }
  0x23   :  { %165 = vmatpush.bf16.msra.mxu0 %v543_v4  ;;  %288 = vmatpush.bf16.msra.mxu1 %v552_v23  ;;  %v575_v23 = vld [vmem:[#allocation2] ss:$0 sm:$0xff] }
  0x24   :  { %v185_v22 = vadd.f32 %v577_v12, %v184_v18  ;;  %v555_v18 = vld [vmem:[#allocation9] sm:$0xff] }
  0x25   :  { %412 = vmatpush.bf16.msra.mxu2 %v560_v2 }
  0x26   :  { %v784_v27 = vsel %vm186_vm0, %v577_v12, %v185_v22  ;;  %v557_v12 = vld [vmem:[#allocation9 + $0x10] sm:$0xff] }
  0x27   :  { %166 = vmatpush.bf16.msra.mxu0 %v542_v5  ;;  %289 = vmatpush.bf16.msra.mxu1 %v551_v28 }
  0x2b   :  { %167 = vmatpush.bf16.msra.mxu0 %v541_v6  ;;  %290 = vmatpush.bf16.msra.mxu1 %v550_v31  ;;  %v559_v6 = vld [vmem:[#allocation9 + $0x20] sm:$0xff]  ;;  %v315_v31 = vld [vmem:[%s810_s5] sm:$0x1] }
  0x2c   :  { %413 = vmatpush.bf16.msra.mxu2 %v559_v6 }
  0x2f   :  { %168 = vmatpush.bf16.msra.mxu0 %v540_v7  ;;  %291 = vmatpush.bf16.msra.mxu1 %v549_v34 }
  0x30   :  { %414 = vmatpush.bf16.msra.mxu2 %v558_v9 }
  0x33   :  { %169 = vmatpush.bf16.msra.mxu0 %v539_v8  ;;  %292 = vmatpush.bf16.msra.mxu1 %v548_v37 }
  0x34   :  { %415 = vmatpush.bf16.msra.mxu2 %v557_v12 }
  0x36   :  { %170 = vmatmul.bf16.vlgmr.msra.gmra.mxu0 %v97_v10 }
  0x37   :  { %293 = vmatpush.bf16.msra.mxu1 %v547_v40 }
  0xb3   :  { %v171_v15 = vpop.f32.mrf.mxu0 }
  0xb4   :  { %v175_v17 = vrot.slane %v171_v15, 4 }
  0xb6   :  { %v176_v19 = vadd.f32 %v175_v17, %v171_v15 }
  0xb8   :  { %v177_v21 = vrot.slane %v176_v19, 2 }
  0xba   :  { %v178_v24 = vadd.f32 %v177_v21, %v176_v19 }
  0xbb   :  { %v173_v25 = vpop.f32.mrf.mxu0 }
  0xbc   :  { %v179_v26 = vrot.slane %v178_v24, 1 }
  0xbe   :  { %v180_v29 = vadd.f32 %v179_v26, %v178_v24  ;;  %v717_v24 = vmov 0  }
  0xbf   :  { %572 = vset.pattern.permute.xlu0 %v717_v24 }
  0xc0   :  { %v188_v30 = vmul.f32 %v784_v27, %v180_v29  ;;  %359 = vperm.xlu0 %572, %v575_v23  }
  0xc2   :  { %v189_v32 = vsub.f32 %v171_v15, %v188_v30  ;;  %v556_v15 = vld [vmem:[#allocation9 + $0x8] sm:$0xff] }
  0xc3   :  { %416 = vmatpush.bf16.msra.mxu2 %v556_v15 }
  0xc4   :  { %v190_v33 = vmul.f32 %v189_v32, %v189_v32 }
  0xc6   :  { %v191_v35 = vrot.slane %v190_v33, 4 }
  0xc7   :  { %417 = vmatpush.bf16.msra.mxu2 %v555_v18 }
  0xc8   :  { %v192_v36 = vadd.f32 %v191_v35, %v190_v33  ;;  %v574_v35 = vld [vmem:[%s811_s6] ss:$0 sm:$0xff] }
  0xca   :  { %v193_v38 = vrot.slane %v192_v36, 2 }
  0xcc   :  { %v194_v39 = vadd.f32 %v193_v38, %v192_v36 }
  0xce   :  { %v195_v41 = vrot.slane %v194_v39, 1 }
  0xd0   :  { %v196_v42 = vadd.f32 %v195_v41, %v194_v39 }
  0xd2   :  { %v197_v43 = vmul.f32 %v196_v42, %v784_v27 }
  0xd4   :  { %v199_v44 = vadd.f32 1e-05, %v197_v43 }
  0xd6   :  { %578 = vrsqrt.f32 %v199_v44  ;;  %vm206_vm2 = vweird.f32 %v199_v44 }
  0xdc   :  { %v579_v45 = vpop.eup %578 }
  0xdd   :  { %v201_v46 = vmul.f32 %v579_v45, %v199_v44  ;;  %vm207_vm1 = vweird.f32 %v579_v45 }
  0xde   :  { %vm208_vm3 = vmor %vm206_vm2, %vm207_vm1 }
  0xdf   :  { %v202_v47 = vmul.f32 %v579_v45, %v201_v46 }
  0xe1   :  { %v203_v48 = vmul.f32 0.5, %v202_v47 }
  0xe3   :  { %v204_v49 = vsub.f32 1.5, %v203_v48 }
  0xe5   :  { %v205_v51 = vmul.f32 %v579_v45, %v204_v49 }
  0xe7   :  { %v209_v52 = vsel %vm208_vm3, %v579_v45, %v205_v51 }
  0xe8   :  { %v210_v53 = vmul.f32 %v209_v52, %v198_v50 }
  0xea   :  { %v212_v54 = vperm.slane %v210_v53, 0 }
  0xec   :  { %v214_v56 = vmul.f32 %v212_v54, %v189_v32 }
  0xee   :  { %v219_v57 = vadd.f32 %v573_v55, %v214_v56 }
  0xf0   :  { %v220_v58 = vmax.f32 %v219_v57, 0.0 }
  0xf2   :  { %v221_v59 = vpack.c.bf16 %v220_v58, %v220_v58 }
  0xf4   :  { %294 = vmatmul.bf16.vlgmr.msra.gmra.mxu1 %v221_v59 }
 0x132   :  { %v360_v40 = vpop.permute.xlu0 %359 }
 0x171   :  { %v295_v60 = vpop.f32.mrf.mxu1 }
 0x172   :  { %v299_v62 = vrot.slane %v295_v60, 4 }
 0x174   :  { %v300_v63 = vadd.f32 %v299_v62, %v295_v60 }
 0x176   :  { %v301_v1 = vrot.slane %v300_v63, 2 }
 0x178   :  { %v302_v3 = vadd.f32 %v301_v1, %v300_v63 }
 0x179   :  { %v297_v4 = vpop.f32.mrf.mxu1 }
 0x17a   :  { %v303_v5 = vrot.slane %v302_v3, 1 }
 0x17c   :  { %v304_v7 = vadd.f32 %v303_v5, %v302_v3 }
 0x17e   :  { %v305_v8 = vmul.f32 %v304_v7, %v784_v27 }
 0x180   :  { %v306_v10 = vsub.f32 %v295_v60, %v305_v8 }
 0x182   :  { %v307_v11 = vmul.f32 %v306_v10, %v306_v10 }
 0x184   :  { %v308_v13 = vrot.slane %v307_v11, 4 }
 0x186   :  { %v309_v14 = vadd.f32 %v308_v13, %v307_v11 }
 0x188   :  { %v310_v16 = vrot.slane %v309_v14, 2 }
 0x18a   :  { %v311_v17 = vadd.f32 %v310_v16, %v309_v14 }
 0x18c   :  { %v312_v19 = vrot.slane %v311_v17, 1 }
 0x18e   :  { %v313_v20 = vadd.f32 %v312_v19, %v311_v17 }
 0x190   :  { %v314_v21 = vmul.f32 %v313_v20, %v784_v27 }
 0x192   :  { %v316_v22 = vadd.f32 1e-05, %v314_v21 }
 0x194   :  { %580 = vrsqrt.f32 %v316_v22  ;;  %vm323_vm5 = vweird.f32 %v316_v22 }
 0x19a   :  { %v581_v25 = vpop.eup %580 }
 0x19b   :  { %v318_v26 = vmul.f32 %v581_v25, %v316_v22  ;;  %vm324_vm4 = vweird.f32 %v581_v25 }
 0x19c   :  { %vm325_vm6 = vmor %vm323_vm5, %vm324_vm4 }
 0x19d   :  { %v319_v28 = vmul.f32 %v581_v25, %v318_v26 }
 0x19f   :  { %v320_v29 = vmul.f32 0.5, %v319_v28 }
 0x1a1   :  { %v321_v30 = vsub.f32 1.5, %v320_v29 }
 0x1a3   :  { %v322_v32 = vmul.f32 %v581_v25, %v321_v30 }
 0x1a5   :  { %v326_v27 = vsel %vm325_vm6, %v581_v25, %v322_v32 }
 0x1a6   :  { %v327_v33 = vmul.f32 %v326_v27, %v315_v31 }
 0x1a8   :  { %v329_v34 = vperm.slane %v327_v33, 0 }
 0x1aa   :  { %v331_v36 = vmul.f32 %v329_v34, %v306_v10 }
 0x1ac   :  { %v336_v37 = vadd.f32 %v574_v35, %v331_v36 }
 0x1ae   :  { %v337_v38 = vmax.f32 %v336_v37, 0.0 }
 0x1b0   :  { %v338_v39 = vpack.c.bf16 %v337_v38, %v337_v38 }
 0x1b2   :  { %418 = vmatmul.bf16.vlgmr.msra.gmra.mxu2 %v338_v39 }
 0x235   :  { %v419_v41 = vpop.f32.mrf.mxu2 }
 0x236   :  { %v420_v42 = vadd.f32 %v419_v41, %v360_v40 }
 0x238   :  { %423 = vst [vmem:[#allocation11] sm:$0xff] %v420_v42 }
 0x239   :  { %434 = dma.vmem_to_hbm [thread:$0]  %s430_s14, 128, %s432_s16, [#allocation5]  }
 0x23d   :  { %v421_v43 = vpop.f32.mrf.mxu2 }
 0x23e   :  { %708 = dma.done.wait [#allocation5], 128  }
 0x23f   :  { %709 = vsyncadd [#allocation5], 4294967168 }
 0x240   :  { %439 = vsyncpa [#allocation4], 1 }
 0x241   :  { %440 = vsyncpa [#allocation7], 1 }
 0x242   :  { %441 = vsyncpa [#allocation10], 1 }
 0x243   :  { %442 = vsyncpa [#allocation5], 1 }

</bundles_post_ra>
